<compile_context>
chip_gen: v5e
topology: v5e:2x2
jax: 0.10.0
libtpu: 0.0.40
codegen_flags: <defaults>
</compile_context>

<pallas_src>
import math

import jax
import jax.numpy as jnp
from jax.experimental import pallas as pl
from jax.experimental.pallas import tpu as pltpu


# ----------------------------------------------------------------------------
# Glue: sinusoid table (matches get_sinusoid_encoding_table + initialize(), 'adjacent')
# ----------------------------------------------------------------------------
def make_rope_tables(max_position: int, embedding_size: int, dtype=jnp.float32):
    """Returns (cos_position, sin_position), each [max_position, embedding_size]."""
    position = jnp.arange(max_position, dtype=jnp.float32)[:, None]           # [P, 1]
    div_term = jnp.exp(
        jnp.arange(0, embedding_size, 2, dtype=jnp.float32)
        * (-math.log(10000.0) / embedding_size)
    )                                                                          # [D/2]
    angles = position * div_term                                               # [P, D/2]
    cos_position = jnp.repeat(jnp.cos(angles), 2, axis=-1)                     # table[:,1::2] repeated
    sin_position = jnp.repeat(jnp.sin(angles), 2, axis=-1)                     # table[:,0::2] repeated
    return cos_position.astype(dtype), sin_position.astype(dtype)


def prepare_rope_flat_tables(cos_position, sin_position, dtype):
    """One-time prep (outside the per-call path): flatten to [1, P*D] and fold the
    pair sign + lane parity mask into two sin tables.

      sin_even[j] = -sin[j] if j is even else 0     (multiplies qw[j+1])
      sin_odd[j]  = +sin[j] if j is odd  else 0     (multiplies qw[j-1])
    """
    P, D = cos_position.shape
    PD = P * D
    cos_flat = cos_position.reshape(1, PD).astype(dtype)
    sin_flat = sin_position.reshape(1, PD).astype(dtype)
    is_even = (jnp.arange(PD) % 2) == 0
    zeros = jnp.zeros_like(sin_flat)
    sin_even_flat = jnp.where(is_even, -sin_flat, zeros).astype(dtype)
    sin_odd_flat = jnp.where(is_even, zeros, sin_flat).astype(dtype)
    return cos_flat, sin_even_flat, sin_odd_flat


# ----------------------------------------------------------------------------
# Pallas kernel: out = qw * cos + roll(qw,+1)*sin_odd + roll(qw,-1)*sin_even
# (sign + parity already folded into the tables -> pure VPU multiply-add body;
#  the rolls stay on the XLU slot via pltpu.roll)
# ----------------------------------------------------------------------------
def rope_kernel(qw_ref, cos_ref, sin_e_ref, sin_o_ref, out_ref):
    qw = qw_ref[...]                     # (tb, tc)
    tc = qw.shape[1]
    prev = pltpu.roll(qw, 1, 1)          # prev[j] = qw[j-1]; wrapped lane 0 hits sin_odd==0
    nxt = pltpu.roll(qw, tc - 1, 1)      # nxt[j]  = qw[j+1]; wrapped last lane hits sin_even==0
    out_ref[...] = (qw * cos_ref[...]
                    + nxt * sin_e_ref[...]
                    + prev * sin_o_ref[...])


def _largest_aligned_divisor(total: int, align: int, target: int):
    """Largest multiple of `align` that divides `total` and is <= target (None if none)."""
    best = None
    cap = min(total, target)
    d = align
    while d <= cap:
        if total % d == 0:
            best = d
        d += align
    return best


def rope_forward(qw, cos_flat, sin_even_flat, sin_odd_flat, *,
                 row_tile_target=256, target_block_bytes=4 * 1024 * 1024):
    """qw: [BH, S, D]; *_flat: [1, >=S*D] precomputed by prepare_rope_flat_tables.
    Returns [BH, S, D] in qw.dtype."""
    BH, S, D = qw.shape
    assert D % 2 == 0, "embedding_size must be even for 'adjacent' RoPE"
    SD = S * D
    assert cos_flat.shape[1] >= SD, "S exceeds precomputed table size"

    # Match the PyTorch module: tables used in qw's dtype (no-op if prepared in that dtype).
    cos = cos_flat[:, :SD].astype(qw.dtype)
    sin_e = sin_even_flat[:, :SD].astype(qw.dtype)
    sin_o = sin_odd_flat[:, :SD].astype(qw.dtype)

    # Lane-dense flattening: last dim becomes S*D (a big multiple of 128 for typical D).
    qw2d = qw.reshape(BH, SD)

    # --- tile selection -------------------------------------------------------
    itemsize = jnp.dtype(qw.dtype).itemsize
    # Sublane tile aligned to the packed-dtype minimum: 8 rows (f32), 16 (bf16), 32 (int8/fp8).
    sub_align = max(8, 32 // max(itemsize, 1))
    tb = _largest_aligned_divisor(BH, sub_align, row_tile_target) or BH
    # Aim for ~target_block_bytes per block (amortizes per-step overhead; 2 in-flight in
    # + 2 out blocks stay well under every generation's scoped VMEM budget).
    lane_target = max(128, (target_block_bytes // max(tb * itemsize, 1)) // 128 * 128)
    tc = _largest_aligned_divisor(SD, 128, lane_target) or SD  # fallback keeps full extent

    # Ensure enough grid steps for pipelining / megacore: >=4 blocks so v7x's 2 TCs each
    # get >=2 double-buffered steps.  Prefer splitting along BH (keeps lanes dense); keep
    # tb aligned to sub_align and tc a multiple of 128 (so tiles start at even lanes).
    min_blocks = 4
    while (BH // tb) * (SD // tc) < min_blocks:
        if tb % (2 * sub_align) == 0:
            tb //= 2
        elif tc % 256 == 0:
            tc //= 2
        else:
            break

    # BH axis innermost: cos/sin block index stays constant across inner steps -> no re-DMA.
    grid = (SD // tc, BH // tb)

    out2d = pl.pallas_call(
        rope_kernel,
        out_shape=jax.ShapeDtypeStruct((BH, SD), qw.dtype),
        grid_spec=pltpu.PrefetchScalarGridSpec(
            num_scalar_prefetch=0,
            grid=grid,
            in_specs=[
                pl.BlockSpec((tb, tc), lambda j, b: (b, j)),
                pl.BlockSpec((1, tc), lambda j, b: (0, j)),
                pl.BlockSpec((1, tc), lambda j, b: (0, j)),
                pl.BlockSpec((1, tc), lambda j, b: (0, j)),
            ],
            out_specs=pl.BlockSpec((tb, tc), lambda j, b: (b, j)),
        ),
        compiler_params=pltpu.CompilerParams(
            dimension_semantics=("parallel", "parallel"),
            # Plenty for 4 x ~4 MiB double-buffered blocks; stays under v7x's 64 MiB
            # physical VMEM while lifting v5e's 16 MiB default scoped limit.
            vmem_limit_bytes=48 * 1024 * 1024,
        ),
    )(qw2d, cos, sin_e, sin_o)

    return out2d.reshape(BH, S, D)


# ----------------------------------------------------------------------------
# Pure-JAX reference (mirrors the PyTorch forward, position_ids=None, 'adjacent')
# ----------------------------------------------------------------------------
def rope_ref(qw, cos_position, sin_position):
    S = qw.shape[-2]
    cos = cos_position[:S].astype(qw.dtype)
    sin = sin_position[:S].astype(qw.dtype)
    even = qw[..., 0::2]
    odd = qw[..., 1::2]
    qw2 = jnp.stack([-odd, even], axis=-1).reshape(qw.shape)
    return qw * cos + qw2 * sin


if __name__ == "__main__":
    B, H, S, D = 2, 4, 8, 32     # embedding_size = 32, seq_len = 8
    key = jax.random.PRNGKey(0)
    qw = jax.random.normal(key, (B, H, S, D), dtype=jnp.float32)

    # Build tables once (matches RoPEPositionEncoding.initialize), then the signed/masked
    # flattened kernel tables once (outside the per-call path, per perf review).
    cos_position, sin_position = make_rope_tables(S, D)
    cos_flat, sin_even_flat, sin_odd_flat = prepare_rope_flat_tables(
        cos_position, sin_position, qw.dtype)

    out = rope_forward(qw.reshape(B * H, S, D), cos_flat, sin_even_flat, sin_odd_flat)
    out = out.reshape(B, H, S, D)
    jax.block_until_ready(out)

    expected = rope_ref(qw, cos_position, sin_position)
    assert jnp.allclose(out, expected, atol=1e-5, rtol=1e-5), "mismatch vs reference"

    print("KERNEL_OK")
</pallas_src>

<mosaic_0001>
module attributes {stable_mosaic.version = 11 : i64} {
  func.func @rope_kernel(%arg0: i32, %arg1: i32, %arg2: memref<8x128xf32, #tpu.memory_space<vmem>>, %arg3: memref<1x128xf32, #tpu.memory_space<vmem>>, %arg4: memref<1x128xf32, #tpu.memory_space<vmem>>, %arg5: memref<1x128xf32, #tpu.memory_space<vmem>>, %arg6: memref<8x128xf32, #tpu.memory_space<vmem>>) attributes {dimension_semantics = [#tpu.dimension_semantics<parallel>, #tpu.dimension_semantics<parallel>], iteration_bounds = array<i64: 2, 1>, scalar_prefetch = 0 : i64, scratch_operands = 0 : i64, tpu.core_type = #tpu.core_type<tc>, window_params = [{transform_indices = @transform_0, window_bounds = array<i64: 8, 128>}, {transform_indices = @transform_1, window_bounds = array<i64: 1, 128>}, {transform_indices = @transform_2, window_bounds = array<i64: 1, 128>}, {transform_indices = @transform_3, window_bounds = array<i64: 1, 128>}, {transform_indices = @transform_4, window_bounds = array<i64: 8, 128>}]} {
    %c0 = arith.constant 0 : index
    %c0_0 = arith.constant 0 : index
    %0 = vector.load %arg2[%c0, %c0_0] : memref<8x128xf32, #tpu.memory_space<vmem>>, vector<8x128xf32>
    %c1_i32 = arith.constant 1 : i32
    %1 = tpu.dynamic_rotate %0 by %c1_i32 dim 1 : vector<8x128xf32>, i32 -> vector<8x128xf32>
    %c127_i32 = arith.constant 127 : i32
    %2 = tpu.dynamic_rotate %0 by %c127_i32 dim 1 : vector<8x128xf32>, i32 -> vector<8x128xf32>
    %c0_1 = arith.constant 0 : index
    %c0_2 = arith.constant 0 : index
    %3 = vector.load %arg3[%c0_1, %c0_2] : memref<1x128xf32, #tpu.memory_space<vmem>>, vector<1x128xf32>
    %4 = vector.broadcast %3 : vector<1x128xf32> to vector<8x128xf32>
    %5 = arith.mulf %0, %4 : vector<8x128xf32>
    %c0_3 = arith.constant 0 : index
    %c0_4 = arith.constant 0 : index
    %6 = vector.load %arg4[%c0_3, %c0_4] : memref<1x128xf32, #tpu.memory_space<vmem>>, vector<1x128xf32>
    %7 = vector.broadcast %6 : vector<1x128xf32> to vector<8x128xf32>
    %8 = arith.mulf %2, %7 : vector<8x128xf32>
    %9 = arith.addf %5, %8 : vector<8x128xf32>
    %c0_5 = arith.constant 0 : index
    %c0_6 = arith.constant 0 : index
    %10 = vector.load %arg5[%c0_5, %c0_6] : memref<1x128xf32, #tpu.memory_space<vmem>>, vector<1x128xf32>
    %11 = vector.broadcast %10 : vector<1x128xf32> to vector<8x128xf32>
    %12 = arith.mulf %1, %11 : vector<8x128xf32>
    %13 = arith.addf %9, %12 : vector<8x128xf32>
    %c0_7 = arith.constant 0 : index
    %c0_8 = arith.constant 0 : index
    %14 = vector.load %arg6[%c0_7, %c0_8] : memref<8x128xf32, #tpu.memory_space<vmem>>, vector<8x128xf32>
    tpu.vector_store %arg6[%c0_7, %c0_8], %13 {strides = array<i32>} : memref<8x128xf32, #tpu.memory_space<vmem>>, vector<8x128xf32>,
    return
  }
  func.func @transform_0(%arg0: i32, %arg1: i32) -> (i32, i32) {
    %c0_i32 = arith.constant 0 : i32
    return %arg1, %arg0 : i32, i32
  }
  func.func @transform_1(%arg0: i32, %arg1: i32) -> (i32, i32) {
    %c0_i32 = arith.constant 0 : i32
    %c0_i32_0 = arith.constant 0 : i32
    return %c0_i32, %arg0 : i32, i32
  }
  func.func @transform_2(%arg0: i32, %arg1: i32) -> (i32, i32) {
    %c0_i32 = arith.constant 0 : i32
    %c0_i32_0 = arith.constant 0 : i32
    return %c0_i32, %arg0 : i32, i32
  }
  func.func @transform_3(%arg0: i32, %arg1: i32) -> (i32, i32) {
    %c0_i32 = arith.constant 0 : i32
    %c0_i32_0 = arith.constant 0 : i32
    return %c0_i32, %arg0 : i32, i32
  }
  func.func @transform_4(%arg0: i32, %arg1: i32) -> (i32, i32) {
    %c0_i32 = arith.constant 0 : i32
    return %arg1, %arg0 : i32, i32
  }
}

</mosaic_0001>

<bundles_post_ra>
// kernel: tpu_custom_call.1
= control target key start
LH: loop header
LB: loop body
LE: loop exit
PB: predicated region body
PF: predicated region fallthrough
CT: control target
= control target key end

     0   :  { %s937_s0 = inlined_call_operand.hbm [shape: f32[8,256], index: 0, kind: input, shape index: {}]   ;;  %s938_s1 = inlined_call_operand.hbm [shape: f32[1,256], index: 1, kind: input, shape index: {}]   ;;  %s939_s2 = inlined_call_operand.hbm [shape: f32[1,256], index: 2, kind: input, shape index: {}]   ;;  %s940_s3 = inlined_call_operand.vmem [shape: f32[1,256], index: 3, kind: input, shape index: {}]   ;;  %s941_s4 = inlined_call_operand.hbm [shape: f32[8,256], index: 4, kind: output, shape index: {}]  }
   0x1   :  { %946 = sst [smem:[#allocation16_spill]] %s938_s1 }
   0x2   :  { %9 = vsyncpa [#allocation3], 0 }
   0x3   :  { %11 = vsyncpa [#allocation3 + $0x1], 0 }
   0x4   :  { %12 = vsyncpa [#allocation6], 0 }
   0x5   :  { %14 = vsyncpa [#allocation6 + $0x1], 0 }
   0x6   :  { %15 = vsyncpa [#allocation4], 0 }
   0x7   :  { %17 = vsyncpa [#allocation4 + $0x1], 0  ;;  %s776_s15 = smov 0   ;;  %s778_s16 = smov 0  }
   0x8   :  { %s780_s17 = smov 0   ;;  %s782_s18 = smov 0  }
   0x9   :  { %s784_s19 = smov 0   ;;  %s786_s20 = smov 0  }
   0xa LB: > { %947 = sst [smem:[#allocation12_spill]] %s735_s17  ;;  %s807_s21 = sadd.s32 4294967295, %s747_s20   ;;  %s747_s20 = sphi %s786_s20, %s23_s20   ;;  %s743_s19 = sphi %s784_s19, %s965_s19   ;;  %s739_s18 = sphi %s782_s18, %s964_s18   ;;  %s735_s17 = sphi %s780_s17, %s960_s17   ;;  %s731_s16 = sphi %s778_s16, %s963_s16   ;;  %s727_s15 = sphi %s776_s15, %s962_s15  }
   0xb   : > { %948 = sst [smem:[#allocation13_spill]] %s747_s20  ;;  %s482_s22 = sadd.s32 4294967294, %s747_s20  }
   0xc   : > { %s35_s23 = sadd.s32 1, %s743_s19  ;;  %s44_s24 = sadd.s32 1, %s735_s17 }
   0xd   : > { %p37_p0 = scmp.ge.s32.totalorder %s35_s23, 2  ;;  %p51_p1 = scmp.ne.s32.totalorder %s735_s17, %s731_s16 }
   0xe   : > { %p52_p2 = scmp.eq.s32.totalorder %s747_s20, 0  ;;  %p57_p3 = scmp.ne.s32.totalorder %s731_s16, %s727_s15 }
   0xf   : > { %s967_s23 = smov (%p37_p0, %s35_s23), 0  ;;  %p58_p5 = scmp.eq.s32.totalorder %s807_s21, 0 }
  0x10   : > { %949 = sst [smem:[#allocation14_spill]] %s967_s23  ;;  %p819_p4 = por %p52_p2, %p51_p1 }
  0x11   : > { %s40_s26 = ssub.s32 %s743_s19, %s967_s23  ;;  %p161_p6 = scmp.eq.s32.totalorder %s807_s21, 1 }
  0x12   : > { %p42_p7 = scmp.eq.s32.totalorder %s40_s26, 0  ;;  %p827_p8 = por %p58_p5, %p57_p3 }
  0x13   : > { %p831_p9 = por %p161_p6, %p51_p1  ;;  %p167_p10 = scmp.eq.s32.totalorder %s482_s22, 1 }
  0x14   : > { %s836_s29 = scalar_select %p42_p7, %s735_s17, %s44_s24  }
  0x15   : > { %p838_p11 = por %p167_p10, %p57_p3  ;;  %p484_p12 = scmp.ge.s32.totalorder %s747_s20, 2 }
  0x16   : > { %953 = sst [smem:[#allocation15_spill]] %s836_s29  ;;  %p516_p13 = scmp.lt.s32.totalorder %s747_s20, 2 }
  0x17   : > { %s187_s5 = sand.u32 1, %s735_s17   ;;  %s208_s6 = sand.u32 1, %s747_s20  }
  0x18   : > { %p848_p0 = pnand %p516_p13, %p819_p4  ;;  %s956_s1 = sld [smem:[#allocation16_spill]] }
  0x19   : > { %s211_s11 = scalar_lea.vmem [#allocation5], %s187_s5  ;;  %s209_s14 = scalar_lea.sflag [#allocation6], %s208_s6 }
  0x1a   : > { %s218_s12 = sshll.u32 %s211_s11, 4  ;;  %p487_p1 = scmp.ge.s32.totalorder %s747_s20, 1  ;;  %s219_s12 = int_to_ptr.vmem [resolvable:$true] %s218_s12 }
  0x1b   : > { %p246_p2 = scmp.lt.s32.totalorder %s747_s20, 3  ;;  %s485_s24 = sshll.u32 %s187_s5, 3 }
  0x1c   : > { %s486_s25 = sshll.u32 %s743_s19, 3  ;;  %s191_s11 = scalar_lea.vmem [#allocation2], %s485_s24 }
  0x1d   : > { %p860_p3 = pnand %p487_p1, %p246_p2  ;;  %s197_s9 = scalar_lea.hbm %s937_s0, %s486_s25 }
  0x1e   : > { %s214_s10 = scalar_lea.hbm %s956_s1, %s743_s19  ;;  %s201_s1 = sshll.u32 %s191_s11, 4  ;;  %s202_s1 = int_to_ptr.vmem [resolvable:$true] %s201_s1 }
  0x1f   : > { %s216_s13 = sshll.u32 %s214_s10, 4  ;;  %s199_s10 = sshll.u32 %s197_s9, 4  ;;  %s217_s13 = int_to_ptr.hbm [resolvable:$true] %s216_s13  ;;  %s200_s10 = int_to_ptr.hbm [resolvable:$true] %s199_s10 }
  0x20   : > { %508 = dma.hbm_to_vmem [thread:$0]  (!%p848_p0), %s217_s13, 16, %s219_s12, %s209_s14  }
  0x21   : > { %s188_s6 = scalar_lea.sflag [#allocation3], %s187_s5  ;;  %s231_s23 = scalar_lea.hbm %s939_s2, %s743_s19 }
  0x22   : > { %505 = dma.hbm_to_vmem [thread:$0]  (!%p848_p0), %s200_s10, 128, %s202_s1, %s188_s6  }
  0x23   : > { %s233_s29 = sshll.u32 %s231_s23, 4  ;;  %s228_s17 = scalar_lea.vmem [#allocation7], %s187_s5  ;;  %s234_s29 = int_to_ptr.hbm [resolvable:$true] %s233_s29 }
  0x24   : > { %s235_s20 = sshll.u32 %s228_s17, 4  ;;  %250 = sbr.rel (%p860_p3) target bundleno = 176 (0xb0), region = 36  ;;  %s236_s20 = int_to_ptr.vmem [resolvable:$true] %s235_s20 }
  0x25   : > { %511 = dma.hbm_to_vmem [thread:$0]  (!%p848_p0), %s234_s29, 16, %s236_s20, %s209_s14  }
  0x26   : > { %s879_s24 = sand.u32 (!%p860_p3), 1, %s731_s16  }
  0x27   : > { %s488_s1 = sshll.u32 (!%p860_p3), %s879_s24, 3  ;;  %s253_s25 = scalar_lea.sflag (!%p860_p3), [#allocation3], %s879_s24 }
  0x28   : > { %s256_s26 = scalar_lea.vmem (!%p860_p3), [#allocation2], %s488_s1 }
  0x29   : > { %714 = dma.done.wait (%p827_p8), %s253_s25, 128  }
  0x2a   : > { %716 = vsyncadd (%p827_p8), %s253_s25, 4294967168  ;;  %s262_s17 = sand.u32 1, %s807_s21   ;;  %s265_s23 = scalar_lea.vmem [#allocation5], %s879_s24 }
  0x2b   : > { %s263_s20 = scalar_lea.sflag [#allocation6], %s262_s17 }
  0x2c   : > { %718 = dma.done.wait (%p827_p8), %s263_s20, 32  }
  0x2d   : > { %720 = vsyncadd (%p827_p8), %s263_s20, 4294967264  ;;  %p311_p4 = scmp.lt.s32.totalorder %s739_s18, 1  ;;  %v314_v0 = vld [vmem:[%s256_s26] sm:$0xff]  ;;  %s749_s22 = smov 127  }
  0x2e   : > { %317 = vrot.lane.b32.xlu0 %v314_v0, %s749_s22  ;;  %s274_s21 = scalar_lea.vmem [#allocation7], %s879_s24  ;;  %s750_s8 = smov 1   ;;  %v568_v1 = vld [vmem:[%s265_s23] ss:$0 sm:$0xff] }
  0x2f   : > { %s312_s29 = scalar_select %p311_p4, %s739_s18, 1  ;;  %v569_v2 = vld [vmem:[%s274_s21] ss:$0 sm:$0xff]  ;;  %v323_v3 = vmul.f32 %v568_v1, %v314_v0 }
  0x30   : > { %s491_s27 = sshll.u32 %s739_s18, 3  ;;  %s310_s6 = scalar_lea.vmem [#allocation8], %s488_s1 }
  0x31   : > { %s313_s14 = scalar_lea.vmem %s940_s3, %s312_s29  ;;  %s350_s11 = scalar_lea.hbm %s941_s4, %s491_s27 }
  0x32   : > { %v570_v7 = vld [vmem:[%s313_s14] ss:$0 sm:$0xff]  ;;  %s352_s12 = sshll.u32 %s310_s6, 4  ;;  %s354_s13 = sshll.u32 %s350_s11, 4  ;;  %s353_s12 = int_to_ptr.vmem [resolvable:$true] %s352_s12  ;;  %s355_s13 = int_to_ptr.hbm [resolvable:$true] %s354_s13 }
  0x33   : > { %s338_s25 = scalar_lea.sflag [#allocation4], %s879_s24  ;;  %s675_s26 = sshra.s32 %s355_s13, 4  ;;  %s676_s26 = int_to_ptr.hbm [resolvable:$true] %s675_s26 }
  0x34   : > { %s677_s18 = scalar_lea.hbm %s676_s26, 8  ;;  %s681_s23 = scalar_lea.hbm %s941_s4, 16 }
  0x35   : > { %p678_p5 = scmp.ne.s32.totalorder %s676_s26, %s677_s18  ;;  %p682_p8 = scmp.lt.s32.totalorder %s676_s26, %s941_s4 }
  0x36   : > { %315 = vrot.lane.b32.xlu0 %v314_v0, %s750_s8  ;;  %p683_p10 = scmp.lt.s32.totalorder %s681_s23, %s677_s18 }
  0x37   : > { %p679_p6 = pnand %p678_p5, %p831_p9 }
  0x38   : > { %p684_p13 = por %p683_p10, %p682_p8 }
  0x39   : > { %p680_p7 = pneg %p679_p6 }
  0x3b   : > { %p685_p0 = pnand %p684_p13, %p680_p7 }
  0xa0   : > { %v318_v4 = vpop.permute.xlu0 %317 }
  0xa1   : > { %v328_v5 = vmul.f32 %v569_v2, %v318_v4 }
  0xa3   : > { %v329_v6 = vadd.f32 %v328_v5, %v323_v3 }
  0xa8   : > { %v316_v8 = vpop.permute.xlu0 %315 }
  0xa9   : > { %v334_v9 = vmul.f32 %v570_v7, %v316_v8 }
  0xab   : > { %v335_v10 = vadd.f32 %v334_v9, %v329_v6 }
  0xad   : > { %336 = vst [vmem:[%s310_s6] sm:$0xff] %v335_v10 }
  0xae   : > { %688 = shalt.err (!%p685_p0)
}
  0xaf   : > { %500 = dma.vmem_to_hbm [thread:$0]  (%p831_p9), %s353_s12, 128, %s355_s13, %s338_s25  }
  0xb0 PF: > { %s958_s24 = sld [smem:[#allocation13_spill]]  ;;  %s366_s5 = sand.u32 1, %s727_s15  }
  0xb1   : > { %p513_p1 = pnand %p484_p12, %p838_p11  ;;  %s367_s7 = scalar_lea.sflag [#allocation4], %s366_s5 }
  0xb3   : > { %p514_p2 = pneg %p513_p1 }
  0xb5   : > { %722 = dma.done.wait (%p514_p2), %s367_s7, 128  }
  0xb6   : > { %724 = vsyncadd (%p514_p2), %s367_s7, 4294967168  ;;  %s23_s20 = sadd.s32 1, %s958_s24   ;;  %s959_s14 = sld [smem:[#allocation12_spill]] }
  0xb7   : > { %p20_p3 = scmp.ge.s32.totalorder %s23_s20, 4   ;;  %s960_s17 = sld [smem:[#allocation15_spill]] }
  0xb8   : > { %s961_s28 = sld [smem:[#allocation14_spill]]  ;;  %s962_s15 = smov %s731_s16 }
  0xb9   : > { %s964_s18 = smov %s743_s19 }
  0xba   :  { %22 = sbr.rel (!%p20_p3) target bundleno = 10 (0xa), region = 108 }
  0xbc   : > { %s963_s16 = smov %s959_s14 }
  0xbe   : > { %s965_s19 = smov %s961_s28 }
  0xbf   :  { %373 = vsyncpa [#allocation3], 1 }
  0xc0   :  { %375 = vsyncpa [#allocation3 + $0x1], 1 }
  0xc1   :  { %376 = vsyncpa [#allocation6], 1 }
  0xc2   :  { %378 = vsyncpa [#allocation6 + $0x1], 1 }
  0xc3   :  { %379 = vsyncpa [#allocation4], 1 }
  0xc4   :  { %381 = vsyncpa [#allocation4 + $0x1], 1 }

</bundles_post_ra>
